<compile_context>
chip_gen: v5e
topology: v5e:2x2
jax: 0.10.0
libtpu: 0.0.40
codegen_flags: <defaults>
</compile_context>

<pallas_src>
import functools
import math

import jax
import jax.numpy as jnp
from jax import lax
from jax.experimental import pallas as pl
from jax.experimental.pallas import tpu as pltpu


def _erf(x):
    # Abramowitz & Stegun 7.1.26, |err| < 1.5e-7 (~f32 eps).  The divide is an
    # EUP reciprocal so it stays off the VALU critical path.
    a1, a2, a3, a4, a5 = 0.254829592, -0.284496736, 1.421413741, -1.453152027, 1.061405429
    p = 0.3275911
    s = jnp.where(x >= 0.0, 1.0, -1.0)
    ax = jnp.abs(x)
    t = pl.reciprocal(1.0 + p * ax, approx=True)
    poly = ((((a5 * t + a4) * t + a3) * t + a2) * t + a1) * t
    return s * (1.0 - poly * jnp.exp(-ax * ax))


def _gelu_exact(x):
    # erf-form GELU == torch.nn.functional.gelu default
    return 0.5 * x * (1.0 + _erf(x * (1.0 / math.sqrt(2.0))))


def _moe_expert_kernel(be_ref,                       # scalar prefetch: [nblocks] expert id per token block
                       x_ref, w1_ref, b1_ref, w2_ref, b2_ref, wgt_ref,
                       out_ref, acc_ref):
    f = pl.program_id(1)

    @pl.when(f == 0)
    def _():
        acc_ref[...] = jnp.zeros_like(acc_ref)

    # first matmul (bf16 MXU, f32 accum) + bias + exact GELU on this d_ff chunk
    h = jnp.dot(x_ref[...], w1_ref[0], preferred_element_type=jnp.float32)
    h = _gelu_exact(h + b1_ref[0])
    # dropout: identity in eval mode
    # second matmul: contract this d_ff chunk into the resident f32 accumulator
    acc_ref[...] += jnp.dot(h.astype(jnp.bfloat16), w2_ref[0],
                            preferred_element_type=jnp.float32)

    @pl.when(f == pl.num_programs(1) - 1)
    def _():
        out_ref[...] = (wgt_ref[...] * (acc_ref[...] + b2_ref[0])).astype(out_ref.dtype)


def moe_ffn(x, gw, gb, w1, b1, w2, b2, *, num_experts_per_token=2,
            token_block=256, ff_block=None):
    """MoE FFN forward.
    x:[B,S,D]  gw:[D,E]  gb:[1,E]  w1:[E,D,F]  b1:[E,1,F]  w2:[E,F,D]  b2:[E,1,D]
    (expert weights already transposed vs torch nn.Linear)."""
    B, S, D = x.shape
    E, _, F = w1.shape
    k = num_experts_per_token
    T = B * S
    tt = token_block
    tf = F if ff_block is None else ff_block
    assert F % tf == 0 and tt % 8 == 0

    x_flat = x.reshape(T, D).astype(jnp.float32)

    # ---------------- router (XLA): gate -> top-k -> softmax ----------------
    logits = x_flat @ gw.astype(jnp.float32) + gb.astype(jnp.float32)      # (T, E)
    top_vals, top_idx = lax.top_k(logits, k)                               # (T, k)
    top_w = jax.nn.softmax(top_vals, axis=-1)                              # (T, k)

    # ------------- sort (token, slot) assignments by expert -----------------
    A = T * k
    expert_flat = top_idx.reshape(A).astype(jnp.int32)
    token_flat = jnp.repeat(jnp.arange(T, dtype=jnp.int32), k)
    weight_flat = top_w.reshape(A).astype(jnp.float32)

    order = jnp.argsort(expert_flat)                 # stable
    expert_sorted = expert_flat[order]
    token_sorted = token_flat[order]
    weight_sorted = weight_flat[order]

    # group sizes / starts, each group padded to whole token blocks
    g = jnp.bincount(expert_sorted, length=E).astype(jnp.int32)            # (E,)
    gp = ((g + tt - 1) // tt) * tt
    start = jnp.concatenate([jnp.zeros((1,), jnp.int32), jnp.cumsum(g)[:-1]])
    start_pad = jnp.concatenate([jnp.zeros((1,), jnp.int32), jnp.cumsum(gp)[:-1]])
    end_pad = jnp.cumsum(gp)

    A_pad = pl.cdiv(A + E * (tt - 1), tt) * tt       # static upper bound
    nblocks = A_pad // tt

    rank = jnp.arange(A, dtype=jnp.int32) - start[expert_sorted]
    dest = start_pad[expert_sorted] + rank                                  # (A,)

    # padding rows: token 0 with routing weight 0 -> contribute exactly zero
    tok_pad = jnp.zeros((A_pad,), jnp.int32).at[dest].set(token_sorted)
    wgt_pad = jnp.zeros((A_pad, 1), jnp.float32).at[dest].set(weight_sorted[:, None])
    x_pad = x_flat[tok_pad].astype(jnp.bfloat16)                            # (A_pad, D)

    block_rows = jnp.arange(nblocks, dtype=jnp.int32) * tt
    block_expert = jnp.clip(
        jnp.searchsorted(end_pad, block_rows, side='right'), 0, E - 1
    ).astype(jnp.int32)                                                     # (nblocks,)

    # ------------------------- expert compute kernel ------------------------
    w1b = w1.astype(jnp.bfloat16)
    w2b = w2.astype(jnp.bfloat16)
    b1f = b1.astype(jnp.float32)
    b2f = b2.astype(jnp.float32)

    y = pl.pallas_call(
        _moe_expert_kernel,
        out_shape=jax.ShapeDtypeStruct((A_pad, D), jnp.float32),
        grid_spec=pltpu.PrefetchScalarGridSpec(
            num_scalar_prefetch=1,
            grid=(nblocks, F // tf),
            in_specs=[
                pl.BlockSpec((tt, D), lambda b, f, be: (b, 0)),             # x rows of this block
                pl.BlockSpec((1, D, tf), lambda b, f, be: (be[b], 0, f)),   # w1[e][:, f-chunk]
                pl.BlockSpec((1, 1, tf), lambda b, f, be: (be[b], 0, f)),   # b1[e][f-chunk]
                pl.BlockSpec((1, tf, D), lambda b, f, be: (be[b], f, 0)),   # w2[e][f-chunk, :]
                pl.BlockSpec((1, 1, D), lambda b, f, be: (be[b], 0, 0)),    # b2[e]
                pl.BlockSpec((tt, 1), lambda b, f, be: (b, 0)),             # routing weights
            ],
            out_specs=pl.BlockSpec((tt, D), lambda b, f, be: (b, 0)),       # per-assignment output
            scratch_shapes=[pltpu.VMEM((tt, D), jnp.float32)],
        ),
        compiler_params=pltpu.CompilerParams(
            dimension_semantics=("parallel", "arbitrary")),
    )(block_expert, x_pad, w1b, b1f, w2b, b2f, wgt_pad)

    # --------- scatter-add weighted expert outputs back to token order ------
    out_flat = jnp.zeros((T, D), jnp.float32).at[tok_pad].add(y)
    return out_flat.reshape(B, S, D)


def moe_ffn_ref(x, gw, gb, w1, b1, w2, b2, k=2):
    """Pure-JAX f32 reference mirroring the PyTorch forward (eval mode)."""
    B, S, D = x.shape
    E = w1.shape[0]
    xf = x.reshape(-1, D)
    logits = xf @ gw + gb
    vals, idxs = lax.top_k(logits, k)
    rw = jax.nn.softmax(vals, axis=-1)
    out = jnp.zeros_like(xf)
    for i in range(k):
        for j in range(E):
            mask = (idxs[:, i] == j)[:, None]
            y = jax.nn.gelu(xf @ w1[j] + b1[j], approximate=False) @ w2[j] + b2[j]
            out = out + jnp.where(mask, rw[:, i:i + 1] * y, 0.0)
    return out.reshape(B, S, D)


if __name__ == "__main__":
    # Small shapes consistent with the module: [batch, seq, d_model]
    B, S, D, F, E = 2, 8, 32, 64, 4

    key = jax.random.PRNGKey(0)
    kx, kg, kgb, k1, kb1, k2, kb2 = jax.random.split(key, 7)

    x = jax.random.normal(kx, (B, S, D), dtype=jnp.float32)

    # Deterministic synthetic parameters (torch-Linear-like 1/sqrt(fan_in) scale)
    gw = jax.random.uniform(kg, (D, E), minval=-1.0, maxval=1.0) / math.sqrt(D)
    gb = jax.random.uniform(kgb, (1, E), minval=-1.0, maxval=1.0) / math.sqrt(D)
    w1 = jax.random.uniform(k1, (E, D, F), minval=-1.0, maxval=1.0) / math.sqrt(D)
    b1 = jax.random.uniform(kb1, (E, 1, F), minval=-1.0, maxval=1.0) / math.sqrt(D)
    w2 = jax.random.uniform(k2, (E, F, D), minval=-1.0, maxval=1.0) / math.sqrt(F)
    b2 = jax.random.uniform(kb2, (E, 1, D), minval=-1.0, maxval=1.0) / math.sqrt(F)

    fn = jax.jit(functools.partial(moe_ffn, token_block=16))
    out = fn(x, gw, gb, w1, b1, w2, b2)
    jax.block_until_ready(out)

    ref = moe_ffn_ref(x, gw, gb, w1, b1, w2, b2)
    assert out.shape == (B, S, D)
    max_err = float(jnp.max(jnp.abs(out - ref)))
    # bf16 matmuls with f32 accumulation (+ approx EUP reciprocal in erf) vs f32 ref
    assert jnp.allclose(out, ref, atol=2e-2, rtol=2e-2), f"mismatch vs reference (max abs err {max_err})"

    print("KERNEL_OK")
</pallas_src>

<mosaic_0001>
module attributes {stable_mosaic.version = 11 : i64} {
  func.func @_moe_expert_kernel(%arg0: i32, %arg1: i32, %arg2: memref<6xi32, #tpu.memory_space<smem>>, %arg3: memref<16x32xbf16, #tpu.memory_space<vmem>>, %arg4: memref<1x32x64xbf16, #tpu.memory_space<vmem>>, %arg5: memref<1x1x64xf32, #tpu.memory_space<vmem>>, %arg6: memref<1x64x32xbf16, #tpu.memory_space<vmem>>, %arg7: memref<1x1x32xf32, #tpu.memory_space<vmem>>, %arg8: memref<16x1xf32, #tpu.memory_space<vmem>>, %arg9: memref<16x32xf32, #tpu.memory_space<vmem>>, %arg10: memref<16x32xf32, #tpu.memory_space<vmem>>) attributes {dimension_semantics = [#tpu.dimension_semantics<parallel>, #tpu.dimension_semantics<arbitrary>], iteration_bounds = array<i64: 6, 1>, scalar_prefetch = 1 : i64, scratch_operands = 1 : i64, tpu.core_type = #tpu.core_type<tc>, window_params = [{transform_indices = @transform_0, window_bounds = array<i64: 16, 32>}, {transform_indices = @transform_1, window_bounds = array<i64: 1, 32, 64>}, {transform_indices = @transform_2, window_bounds = array<i64: 1, 1, 64>}, {transform_indices = @transform_3, window_bounds = array<i64: 1, 64, 32>}, {transform_indices = @transform_4, window_bounds = array<i64: 1, 1, 32>}, {transform_indices = @transform_5, window_bounds = array<i64: 16, 1>}, {transform_indices = @transform_6, window_bounds = array<i64: 16, 32>}]} {
    %c0_i32 = arith.constant 0 : i32
    %0 = arith.cmpi eq, %arg1, %c0_i32 : i32
    %1 = arith.extui %0 : i1 to i32
    %c0_i32_0 = arith.constant 0 : i32
    %2 = arith.cmpi ne, %1, %c0_i32_0 : i32
    scf.if %2 {
      %cst_33 = arith.constant 0.000000e+00 : f32
      %61 = vector.broadcast %cst_33 : f32 to vector<16x32xf32>
      %c0_34 = arith.constant 0 : index
      %c0_35 = arith.constant 0 : index
      %62 = vector.load %arg10[%c0_34, %c0_35] : memref<16x32xf32, #tpu.memory_space<vmem>>, vector<16x32xf32>
      tpu.vector_store %arg10[%c0_34, %c0_35], %61 {strides = array<i32>} : memref<16x32xf32, #tpu.memory_space<vmem>>, vector<16x32xf32>,
    } else {
    }
    %c0 = arith.constant 0 : index
    %c0_1 = arith.constant 0 : index
    %3 = vector.load %arg3[%c0, %c0_1] : memref<16x32xbf16, #tpu.memory_space<vmem>>, vector<16x32xbf16>
    %c0_2 = arith.constant 0 : index
    %c0_3 = arith.constant 0 : index
    %c0_4 = arith.constant 0 : index
    %4 = vector.load %arg4[%c0_2, %c0_3, %c0_4] : memref<1x32x64xbf16, #tpu.memory_space<vmem>>, vector<1x32x64xbf16>
    %5 = vector.shape_cast %4 : vector<1x32x64xbf16> to vector<32x64xbf16>
    %cst = arith.constant dense<0.000000e+00> : vector<16x64xf32>
    %6 = tpu.matmul %3, %5, %cst {dimension_numbers = #tpu.dot_dimension_numbers<[1], [0], [0], [1], [0, 0, 1, 1], [], []>} : vector<16x32xbf16>, vector<32x64xbf16>, vector<16x64xf32> -> vector<16x64xf32>
    %c0_5 = arith.constant 0 : index
    %c0_6 = arith.constant 0 : index
    %c0_7 = arith.constant 0 : index
    %7 = vector.load %arg5[%c0_5, %c0_6, %c0_7] : memref<1x1x64xf32, #tpu.memory_space<vmem>>, vector<1x1x64xf32>
    %8 = vector.shape_cast %7 : vector<1x1x64xf32> to vector<1x64xf32>
    %9 = vector.broadcast %8 : vector<1x64xf32> to vector<16x64xf32>
    %10 = arith.addf %6, %9 : vector<16x64xf32>
    %cst_8 = arith.constant 5.000000e-01 : f32
    %11 = vector.broadcast %cst_8 : f32 to vector<16x64xf32>
    %12 = arith.mulf %11, %10 : vector<16x64xf32>
    %cst_9 = arith.constant 0.707106769 : f32
    %13 = vector.broadcast %cst_9 : f32 to vector<16x64xf32>
    %14 = arith.mulf %10, %13 : vector<16x64xf32>
    %cst_10 = arith.constant 0.000000e+00 : f32
    %15 = vector.broadcast %cst_10 : f32 to vector<16x64xf32>
    %16 = arith.cmpf oge, %14, %15 : vector<16x64xf32>
    %cst_11 = arith.constant 1.000000e+00 : f32
    %cst_12 = arith.constant -1.000000e+00 : f32
    %17 = vector.broadcast %cst_11 : f32 to vector<16x64xf32>
    %18 = vector.broadcast %cst_12 : f32 to vector<16x64xf32>
    %19 = arith.select %16, %17, %18 : vector<16x64xi1>, vector<16x64xf32>
    %20 = math.absf %14 : vector<16x64xf32>
    %cst_13 = arith.constant 0.327591091 : f32
    %21 = vector.broadcast %cst_13 : f32 to vector<16x64xf32>
    %22 = arith.mulf %21, %20 : vector<16x64xf32>
    %cst_14 = arith.constant 1.000000e+00 : f32
    %23 = vector.broadcast %cst_14 : f32 to vector<16x64xf32>
    %24 = arith.addf %23, %22 : vector<16x64xf32>
    %25 = tpu.reciprocal %24 {approx = true} : vector<16x64xf32> -> vector<16x64xf32>
    %cst_15 = arith.constant 1.06140542 : f32
    %26 = vector.broadcast %cst_15 : f32 to vector<16x64xf32>
    %27 = arith.mulf %26, %25 : vector<16x64xf32>
    %cst_16 = arith.constant -1.45315206 : f32
    %28 = vector.broadcast %cst_16 : f32 to vector<16x64xf32>
    %29 = arith.addf %27, %28 : vector<16x64xf32>
    %30 = arith.mulf %29, %25 : vector<16x64xf32>
    %cst_17 = arith.constant 1.42141378 : f32
    %31 = vector.broadcast %cst_17 : f32 to vector<16x64xf32>
    %32 = arith.addf %30, %31 : vector<16x64xf32>
    %33 = arith.mulf %32, %25 : vector<16x64xf32>
    %cst_18 = arith.constant -0.284496725 : f32
    %34 = vector.broadcast %cst_18 : f32 to vector<16x64xf32>
    %35 = arith.addf %33, %34 : vector<16x64xf32>
    %36 = arith.mulf %35, %25 : vector<16x64xf32>
    %cst_19 = arith.constant 0.254829586 : f32
    %37 = vector.broadcast %cst_19 : f32 to vector<16x64xf32>
    %38 = arith.addf %36, %37 : vector<16x64xf32>
    %39 = arith.mulf %38, %25 : vector<16x64xf32>
    %cst_20 = arith.constant 0.000000e+00 : f32
    %40 = vector.broadcast %cst_20 : f32 to vector<16x64xf32>
    %41 = arith.subf %40, %20 : vector<16x64xf32>
    %42 = arith.mulf %41, %20 : vector<16x64xf32>
    %43 = math.exp %42 : vector<16x64xf32>
    %44 = arith.mulf %39, %43 : vector<16x64xf32>
    %cst_21 = arith.constant 1.000000e+00 : f32
    %45 = vector.broadcast %cst_21 : f32 to vector<16x64xf32>
    %46 = arith.subf %45, %44 : vector<16x64xf32>
    %47 = arith.mulf %19, %46 : vector<16x64xf32>
    %cst_22 = arith.constant 1.000000e+00 : f32
    %48 = vector.broadcast %cst_22 : f32 to vector<16x64xf32>
    %49 = arith.addf %48, %47 : vector<16x64xf32>
    %50 = arith.mulf %12, %49 : vector<16x64xf32>
    %c0_23 = arith.constant 0 : index
    %c0_24 = arith.constant 0 : index
    %51 = vector.load %arg10[%c0_23, %c0_24] : memref<16x32xf32, #tpu.memory_space<vmem>>, vector<16x32xf32>
    %52 = arith.truncf %50 : vector<16x64xf32> to vector<16x64xbf16>
    %c0_25 = arith.constant 0 : index
    %c0_26 = arith.constant 0 : index
    %c0_27 = arith.constant 0 : index
    %53 = vector.load %arg6[%c0_25, %c0_26, %c0_27] : memref<1x64x32xbf16, #tpu.memory_space<vmem>>, vector<1x64x32xbf16>
    %54 = vector.shape_cast %53 : vector<1x64x32xbf16> to vector<64x32xbf16>
    %cst_28 = arith.constant dense<0.000000e+00> : vector<16x32xf32>
    %55 = tpu.matmul %52, %54, %cst_28 {dimension_numbers = #tpu.dot_dimension_numbers<[1], [0], [0], [1], [0, 0, 1, 1], [], []>} : vector<16x64xbf16>, vector<64x32xbf16>, vector<16x32xf32> -> vector<16x32xf32>
    %56 = arith.addf %51, %55 : vector<16x32xf32>
    %c0_29 = arith.constant 0 : index
    %c0_30 = arith.constant 0 : index
    %57 = vector.load %arg10[%c0_29, %c0_30] : memref<16x32xf32, #tpu.memory_space<vmem>>, vector<16x32xf32>
    tpu.vector_store %arg10[%c0_29, %c0_30], %56 {strides = array<i32>} : memref<16x32xf32, #tpu.memory_space<vmem>>, vector<16x32xf32>,
    %c0_i32_31 = arith.constant 0 : i32
    %58 = arith.cmpi eq, %arg1, %c0_i32_31 : i32
    %59 = arith.extui %58 : i1 to i32
    %c0_i32_32 = arith.constant 0 : i32
    %60 = arith.cmpi ne, %59, %c0_i32_32 : i32
    scf.if %60 {
      %c0_33 = arith.constant 0 : index
      %c0_34 = arith.constant 0 : index
      %61 = vector.load %arg8[%c0_33, %c0_34] : memref<16x1xf32, #tpu.memory_space<vmem>>, vector<16x1xf32>
      %c0_35 = arith.constant 0 : index
      %c0_36 = arith.constant 0 : index
      %62 = vector.load %arg10[%c0_35, %c0_36] : memref<16x32xf32, #tpu.memory_space<vmem>>, vector<16x32xf32>
      %c0_37 = arith.constant 0 : index
      %c0_38 = arith.constant 0 : index
      %c0_39 = arith.constant 0 : index
      %63 = vector.load %arg7[%c0_37, %c0_38, %c0_39] : memref<1x1x32xf32, #tpu.memory_space<vmem>>, vector<1x1x32xf32>
      %64 = vector.shape_cast %63 : vector<1x1x32xf32> to vector<1x32xf32>
      %65 = vector.broadcast %64 : vector<1x32xf32> to vector<16x32xf32>
      %66 = arith.addf %62, %65 : vector<16x32xf32>
      %67 = vector.broadcast %61 : vector<16x1xf32> to vector<16x32xf32>
      %68 = arith.mulf %67, %66 : vector<16x32xf32>
      %c0_40 = arith.constant 0 : index
      %c0_41 = arith.constant 0 : index
      %69 = vector.load %arg9[%c0_40, %c0_41] : memref<16x32xf32, #tpu.memory_space<vmem>>, vector<16x32xf32>
      tpu.vector_store %arg9[%c0_40, %c0_41], %68 {strides = array<i32>} : memref<16x32xf32, #tpu.memory_space<vmem>>, vector<16x32xf32>,
    } else {
    }
    return
  }
  func.func @transform_0(%arg0: i32, %arg1: i32, %arg2: memref<6xi32, #tpu.memory_space<smem>>) -> (i32, i32) {
    %c0_i32 = arith.constant 0 : i32
    %c0_i32_0 = arith.constant 0 : i32
    return %arg0, %c0_i32 : i32, i32
  }
  func.func @transform_1(%arg0: i32, %arg1: i32, %arg2: memref<6xi32, #tpu.memory_space<smem>>) -> (i32, i32, i32) {
    %0 = arith.index_cast %arg0 : i32 to index
    %1 = memref.load %arg2[%0] : memref<6xi32, #tpu.memory_space<smem>>
    %c0_i32 = arith.constant 0 : i32
    %c0_i32_0 = arith.constant 0 : i32
    return %1, %c0_i32, %arg1 : i32, i32, i32
  }
  func.func @transform_2(%arg0: i32, %arg1: i32, %arg2: memref<6xi32, #tpu.memory_space<smem>>) -> (i32, i32, i32) {
    %0 = arith.index_cast %arg0 : i32 to index
    %1 = memref.load %arg2[%0] : memref<6xi32, #tpu.memory_space<smem>>
    %c0_i32 = arith.constant 0 : i32
    %c0_i32_0 = arith.constant 0 : i32
    return %1, %c0_i32, %arg1 : i32, i32, i32
  }
  func.func @transform_3(%arg0: i32, %arg1: i32, %arg2: memref<6xi32, #tpu.memory_space<smem>>) -> (i32, i32, i32) {
    %0 = arith.index_cast %arg0 : i32 to index
    %1 = memref.load %arg2[%0] : memref<6xi32, #tpu.memory_space<smem>>
    %c0_i32 = arith.constant 0 : i32
    %c0_i32_0 = arith.constant 0 : i32
    return %1, %arg1, %c0_i32 : i32, i32, i32
  }
  func.func @transform_4(%arg0: i32, %arg1: i32, %arg2: memref<6xi32, #tpu.memory_space<smem>>) -> (i32, i32, i32) {
    %0 = arith.index_cast %arg0 : i32 to index
    %1 = memref.load %arg2[%0] : memref<6xi32, #tpu.memory_space<smem>>
    %c0_i32 = arith.constant 0 : i32
    %c0_i32_0 = arith.constant 0 : i32
    %c0_i32_1 = arith.constant 0 : i32
    return %1, %c0_i32, %c0_i32_0 : i32, i32, i32
  }
  func.func @transform_5(%arg0: i32, %arg1: i32, %arg2: memref<6xi32, #tpu.memory_space<smem>>) -> (i32, i32) {
    %c0_i32 = arith.constant 0 : i32
    %c0_i32_0 = arith.constant 0 : i32
    return %arg0, %c0_i32 : i32, i32
  }
  func.func @transform_6(%arg0: i32, %arg1: i32, %arg2: memref<6xi32, #tpu.memory_space<smem>>) -> (i32, i32) {
    %c0_i32 = arith.constant 0 : i32
    %c0_i32_0 = arith.constant 0 : i32
    return %arg0, %c0_i32 : i32, i32
  }
}

</mosaic_0001>

<bundles_post_ra>
// kernel: custom-call.1
= control target key start
LH: loop header
LB: loop body
LE: loop exit
PB: predicated region body
PF: predicated region fallthrough
CT: control target
= control target key end

     0   :  { %s6_s0 = inlined_call_operand.vmem [shape: u32[6], index: 0, kind: output, shape index: {}]  }

// kernel: moe_ffn.1
= control target key start
LH: loop header
LB: loop body
LE: loop exit
PB: predicated region body
PF: predicated region fallthrough
CT: control target
= control target key end

     0   :  { %s888_s27 = smov [#allocation4]   ;;  %s1017_s0 = inlined_call_operand.vmem [shape: s32[6], index: 0, kind: input, shape index: {}]   ;;  %s1018_s1 = inlined_call_operand.vmem [shape: bf16[96,32], index: 1, kind: input, shape index: {}]   ;;  %s1019_s2 = inlined_call_operand.vmem [shape: bf16[4,32,64], index: 2, kind: input, shape index: {}]   ;;  %s1020_s3 = inlined_call_operand.vmem [shape: f32[4,1,64], index: 3, kind: input, shape index: {}]   ;;  %s1021_s4 = inlined_call_operand.vmem [shape: bf16[4,64,32], index: 4, kind: input, shape index: {}]   ;;  %s1022_s5 = inlined_call_operand.vmem [shape: f32[4,1,32], index: 5, kind: input, shape index: {}]   ;;  %s1023_s6 = inlined_call_operand.vmem [shape: f32[96,1], index: 6, kind: input, shape index: {}]   ;;  %s1024_s7 = inlined_call_operand.vmem [shape: f32[96,32], index: 7, kind: output, shape index: {}]  }
   0x1   :  { %s13_s26 = sshll.u32 %s1017_s0, 4  ;;  %s14_s26 = int_to_ptr.vmem [resolvable:$true] %s13_s26 }
   0x2   :  { %16 = dma.vmem_to_smem %s14_s26, 16, %s888_s27, [#allocation3] }
   0x3   :  { %874 = dma.done.wait [#allocation3], 16 }
   0x4   :  { %875 = vsyncadd [#allocation3], 4294967280 }
   0x5   :  { %19 = sfence }
   0x6   :  { %s935_s28 = smov 0   ;;  %s937_s29 = smov 0  }
   0x7   :  { %s939_s30 = smov 0  }
   0x8 LB: > { %s37_s0 = sadd.s32 1, %s882_s29  ;;  %p759_p0 = scmp.ge.s32.totalorder %s886_s30, 1  ;;  %s886_s30 = sphi %s939_s30, %s25_s30   ;;  %s882_s29 = sphi %s937_s29, %s1026_s29   ;;  %s878_s28 = sphi %s935_s28, %s1025_s28  }
   0x9   : > { %p39_p1 = scmp.ge.s32.totalorder %s37_s0, 6  ;;  %p314_p2 = scmp.lt.s32.totalorder %s886_s30, 7 }
   0xb   : > { %s1028_s0 = smov (%p39_p1, %s37_s0), 0  ;;  %p315_p3 = pnand %p759_p0, %p314_p2 }
   0xc   : > { %s385_s8 = sld [smem:[#allocation4 + %s878_s28]] (!%p315_p3)  ;;  %s760_s9 = sshll.u32 (!%p315_p3), %s878_s28, 1 }
   0xd   : > { %318 = sbr.rel (%p315_p3) target bundleno = 361 (0x169), region = 44  ;;  %p380_p4 = scmp.lt.s32.totalorder (!%p315_p3), %s760_s9, 11 }
   0xe   : > { %s395_s10 = sld [smem:[#allocation4 + %s878_s28]] (!%p315_p3) }
   0xf   : > { %s403_s22 = sld [smem:[#allocation4 + %s878_s28]] (!%p315_p3) }
  0x12   : > { %s1030_s9 = smov (!%p380_p4, %s760_s9), 11  ;;  %p386_p5 = scmp.lt.s32.totalorder %s385_s8, 3  ;;  %vm437_vm0 = vcmask 261120   ;;  %v889_v31 = vmov 0   ;;  %v890_v32 = vmov 0.0   ;;  %v891_v54 = vmov -1.0  }
  0x13   : > { %s761_s12 = sshll.u32 %s1030_s9, 2  ;;  %s767_s27 = sshll.u32 %s1030_s9, 3  ;;  %839 = vset.pattern.permute.xlu0 %v889_v31  ;;  %438 = vst.msk [vmem:[#allocation2] sm:$0xff] %vm437_vm0, %v890_v32  ;;  %vm572_vm3 = vcmask 523264  }
  0x14   : > { %p396_p6 = scmp.lt.s32.totalorder %s395_s10, 3  ;;  %s1032_s8 = smov (!%p386_p5, %s385_s8), 3  ;;  %439 = vst.msk [vmem:[#allocation2 + $0x8] sm:$0xff] %vm437_vm0, %v890_v32 }
  0x15   : > { %s802_s11 = sshll.u32 %s1032_s8, 4  ;;  %s383_s21 = scalar_lea.vmem %s1018_s1, %s761_s12 }
  0x16   : > { %s1034_s10 = smov (!%p396_p6, %s395_s10), 3  ;;  %s393_s15 = scalar_lea.vmem %s1019_s2, %s802_s11  ;;  %v804_v2 = vld [vmem:[%s383_s21] sm:$0xff] }
  0x17   : > { %s401_s18 = scalar_lea.vmem %s1020_s3, %s1034_s10  ;;  %v806_v0 = vld [vmem:[%s393_s15 + $0x8] sm:$0xff]  ;;  %v805_v1 = vld [vmem:[%s393_s15] sm:$0xff]  ;;  %p405_p7 = scmp.lt.s32.totalorder %s403_s22, 3 }
  0x18   : > { %477 = vmatpush.bf16.msra.mxu0 %v806_v0  ;;  %v840_v3 = vld [vmem:[%s401_s18] ss:$0 sm:$0xff]  ;;  %s424_s11 = scalar_lea.vmem %s1023_s6, %s767_s27  ;;  %s415_s12 = sld [smem:[#allocation4 + %s878_s28]] }
  0x19   : > { %s1036_s22 = smov (!%p405_p7, %s403_s22), 3  ;;  %v597_v27 = vld [vmem:[%s424_s11] sm:$0xff]  ;;  %v598_v40 = vld [vmem:[%s424_s11 + $0x8] sm:$0xff]  ;;  %s430_s17 = scalar_lea.vmem %s1024_s7, %s767_s27 }
  0x1a   : > { %s803_s23 = sshll.u32 %s1036_s22, 5  ;;  %609 = vperm.xlu0 %839, %v597_v27  }
  0x1b   : > { %s412_s26 = scalar_lea.vmem %s1021_s4, %s803_s23 }
  0x1c   : > { %478 = vmatpush.bf16.msra.mxu0 %v805_v1  ;;  %v810_v9 = vld [vmem:[%s412_s26 + $0x18] sm:$0xff]  ;;  %v809_v14 = vld [vmem:[%s412_s26 + $0x10] sm:$0xff]  ;;  %v808_v17 = vld [vmem:[%s412_s26 + $0x8] sm:$0xff] }
  0x1d   : > { %580 = vmatpush.bf16.msra.mxu1 %v810_v9  ;;  %v807_v22 = vld [vmem:[%s412_s26] sm:$0xff] }
  0x1e   : > { %p416_p8 = scmp.lt.s32.totalorder %s415_s12, 3 }
  0x1f   : > { %782 = vmatmul.msk.bf16.vlgmr.msra.gmra.mxu0 %vm437_vm0, %v804_v2 }
  0x20   : > { %s1038_s12 = smov (!%p416_p8, %s415_s12), 3 }
  0x21   : > { %581 = vmatpush.bf16.msra.mxu1 %v809_v14  ;;  %s418_s15 = scalar_lea.vmem %s1022_s5, %s1038_s12 }
  0x22   : > { %614 = vperm.xlu0 %839, %v598_v40  }
  0x25   : > { %582 = vmatpush.bf16.msra.mxu1 %v808_v17 }
  0x29   : > { %583 = vmatpush.bf16.msra.mxu1 %v807_v22 }
  0x9c   : > { %v480_v4 = vpop.f32.mrf.mxu0 }
  0x9d   : > { %v972_v5 = vadd.f32 %v840_v3, %v480_v4  ;;  %v537_v4 = vld [vmem:[#allocation2] sm:$0xff] }
  0x9f   : > { %v975_v6 = vmul.f32 0.70710677, %v972_v5  ;;  %v485_v62 = vmul.f32 0.5, %v972_v5  ;;  %v538_v5 = vld [vmem:[#allocation2 + $0x8] sm:$0xff] }
  0xa1   : > { %v493_v7 = vand.u32 2147483647, %v975_v6  ;;  %vm489_vm1 = vcmp.ge.f32.partialorder %v975_v6, 0.0 }
  0xa2   : > { %v491_v55 = vsel %vm489_vm1, 1.0, %v891_v54 }
  0xa3   : > { %v495_v8 = vmul.f32 0.3275911, %v493_v7  ;;  %v519_v19 = vsub.f32 0.0, %v493_v7 }
  0xa4   : > { %v482_v10 = vpop.f32.mrf.mxu0 }
  0xa5   : > { %v497_v11 = vadd.f32 1.0, %v495_v8  ;;  %v981_v12 = vadd.f32 %v840_v3, %v482_v10  ;;  %v521_v24 = vmul.f32 %v519_v19, %v493_v7  ;;  %v841_v8 = vld [vmem:[%s418_s15] ss:$0 sm:$0xff] }
  0xa7   : > { %842 = vrcp.f32 %v497_v11  ;;  %v488_v13 = vmul.f32 0.70710677, %v981_v12  ;;  %v523_v29 = vmul.f32 1.442695, %v521_v24  ;;  %v486_v63 = vmul.f32 0.5, %v981_v12  ;;  %v610_v11 = vpop.permute.xlu0 %609 }
  0xa9   : > { %v494_v15 = vand.u32 2147483647, %v488_v13  ;;  %vm490_vm2 = vcmp.ge.f32.partialorder %v488_v13, 0.0 }
  0xaa   : > { %v492_v59 = vsel %vm490_vm2, 1.0, %v891_v54 }
  0xab   : > { %v496_v16 = vmul.f32 0.3275911, %v494_v15  ;;  %v520_v30 = vsub.f32 0.0, %v494_v15 }
  0xad   : > { %v843_v18 = vpop.eup %842  ;;  %v498_v20 = vadd.f32 1.0, %v496_v16  ;;  %v522_v37 = vmul.f32 %v520_v30, %v494_v15 }
  0xae   : > { %v501_v21 = vmul.f32 1.0614054, %v843_v18 }
  0xaf   : > { %844 = vrcp.f32 %v498_v20  ;;  %v525_v43 = vmul.f32 1.442695, %v522_v37  ;;  %v615_v17 = vpop.permute.xlu0 %614 }
  0xb0   : > { %v503_v23 = vadd.f32 -1.4531521, %v501_v21  ;;  %846 = vpow2.f32 %v523_v29 }
  0xb1   : > { %848 = vpow2.f32 %v525_v43 }
  0xb2   : > { %v505_v25 = vmul.f32 %v843_v18, %v503_v23 }
  0xb4   : > { %v507_v26 = vadd.f32 1.4214138, %v505_v25 }
  0xb5   : > { %v845_v28 = vpop.eup %844 }
  0xb6   : > { %v509_v33 = vmul.f32 %v843_v18, %v507_v26  ;;  %v502_v34 = vmul.f32 1.0614054, %v845_v28  ;;  %v847_v46 = vpop.eup %846 }
  0xb7   : > { %v849_v53 = vpop.eup %848 }
  0xb8   : > { %v511_v35 = vadd.f32 -0.28449672, %v509_v33  ;;  %v504_v36 = vadd.f32 -1.4531521, %v502_v34 }
  0xba   : > { %v513_v38 = vmul.f32 %v843_v18, %v511_v35  ;;  %v506_v39 = vmul.f32 %v845_v28, %v504_v36 }
  0xbc   : > { %v515_v41 = vadd.f32 0.2548296, %v513_v38  ;;  %v508_v42 = vadd.f32 1.4214138, %v506_v39 }
  0xbe   : > { %v517_v44 = vmul.f32 %v843_v18, %v515_v41  ;;  %v510_v45 = vmul.f32 %v845_v28, %v508_v42 }
  0xc0   : > { %v527_v47 = vmul.f32 %v847_v46, %v517_v44  ;;  %v512_v48 = vadd.f32 -0.28449672, %v510_v45 }
  0xc2   : > { %v514_v49 = vmul.f32 %v845_v28, %v512_v48  ;;  %v529_v50 = vsub.f32 1.0, %v527_v47 }
  0xc4   : > { %v516_v51 = vadd.f32 0.2548296, %v514_v49  ;;  %v531_v56 = vmul.f32 %v529_v50, %v491_v55 }
  0xc6   : > { %v518_v52 = vmul.f32 %v845_v28, %v516_v51  ;;  %v533_v60 = vadd.f32 1.0, %v531_v56 }
  0xc8   : > { %v528_v57 = vmul.f32 %v849_v53, %v518_v52  ;;  %v535_v1 = vmul.f32 %v533_v60, %v485_v62 }
  0xca   : > { %v530_v58 = vsub.f32 1.0, %v528_v57 }
  0xcc   : > { %v532_v61 = vmul.f32 %v530_v58, %v492_v59 }
  0xce   : > { %v534_v0 = vadd.f32 1.0, %v532_v61 }
  0xd0   : > { %v536_v2 = vmul.f32 %v534_v0, %v486_v63 }
  0xd2   : > { %v539_v3 = vpack.c.bf16 %v536_v2, %v535_v1 }
  0xd4   : > { %799 = vmatmul.msk.bf16.vlgmr.msra.gmra.mxu1 %vm572_vm3, %v539_v3 }
 0x151   : > { %v585_v6 = vpop.f32.mrf.mxu1 }
 0x152   : > { %v590_v7 = vadd.f32 %v585_v6, %v537_v4 }
 0x154   : > { %592 = vst.msk [vmem:[#allocation2] sm:$0xff] %vm437_vm0, %v590_v7 }
 0x159   : > { %v587_v9 = vpop.f32.mrf.mxu1 }
 0x15a   : > { %v591_v10 = vadd.f32 %v587_v9, %v538_v5 }
 0x15b   : > { %v599_v12 = vld [vmem:[#allocation2] sm:$0xff] }
 0x15c   : > { %v605_v13 = vadd.f32 %v841_v8, %v599_v12  ;;  %593 = vst.msk [vmem:[#allocation2 + $0x8] sm:$0xff] %vm437_vm0, %v591_v10 }
 0x15e   : > { %v617_v14 = vmul.f32 %v610_v11, %v605_v13 }
 0x160   : > { %619 = vst.msk [vmem:[%s430_s17] sm:$0xff] %vm437_vm0, %v617_v14 }
 0x163   : > { %v600_v15 = vld [vmem:[#allocation2 + $0x8] sm:$0xff] }
 0x164   : > { %v606_v16 = vadd.f32 %v841_v8, %v600_v15 }
 0x166   : > { %v618_v18 = vmul.f32 %v615_v17, %v606_v16 }
 0x168   : > { %620 = vst.msk [vmem:[%s430_s17 + $0x8] sm:$0xff] %vm437_vm0, %v618_v18 }
 0x169 PF: > { %s25_s30 = sadd.s32 1, %s886_s30   ;;  %s1025_s28 = smov %s882_s29 }
 0x16a   : > { %p22_p9 = scmp.ge.s32.totalorder %s25_s30, 8   ;;  %s1026_s29 = smov %s1028_s0 }
 0x16c   :  { %24 = sbr.rel (!%p22_p9) target bundleno = 8 (0x8), region = 97 }

</bundles_post_ra>
